<compile_context>
chip_gen: v6e
topology: v6e:2x2x1
jax: 0.10.0
libtpu: 0.0.40
codegen_flags: <defaults>
</compile_context>

<pallas_src>
import functools

import jax
import jax.numpy as jnp
import numpy as np
from jax.experimental import pallas as pl
from jax.experimental.pallas import tpu as pltpu


# ---------------------------------------------------------------------------
# Pass 1: fused LayerNorm + QKV projection (computed exactly once per row).
# ---------------------------------------------------------------------------
def _ln_qkv_proj_kernel(x_ref, gamma_ref, beta_ref, wqkv_ref, qkv_ref):
    x = x_ref[...]                                          # (tb, d_model) f32
    mean = jnp.mean(x, axis=-1, keepdims=True)
    var = jnp.mean((x - mean) ** 2, axis=-1, keepdims=True)
    xn = (x - mean) * jax.lax.rsqrt(var + 1e-5) * gamma_ref[...] + beta_ref[...]
    # Single fused (tb, d_model) @ (d_model, 3*d_feat) MXU matmul (one weight
    # push for Q, K and V), f32 accumulate, cast once to bf16, lane-dense store.
    qkv_ref[...] = jnp.dot(xn.astype(jnp.bfloat16), wqkv_ref[...],
                           preferred_element_type=jnp.float32).astype(jnp.bfloat16)


# ---------------------------------------------------------------------------
# Pass 2: flash-style attention (online softmax over key tiles) + fc + residual.
# ---------------------------------------------------------------------------
def _gat_attn_kernel(x_ref, q_ref, k_ref, v_ref, fcw_ref, fcb_ref, out_ref,
                     m_sc, l_sc, acc_sc, *, inv_temp):
    ki = pl.program_id(1)
    nk = pl.num_programs(1)
    n_head = q_ref.shape[0]

    @pl.when(ki == 0)
    def _():
        m_sc[...] = jnp.full_like(m_sc, -jnp.inf)
        l_sc[...] = jnp.zeros_like(l_sc)
        acc_sc[...] = jnp.zeros_like(acc_sc)

    # Head-batched scores (n_head, tq, tk): bf16 operands, f32 MXU accumulation.
    s = jnp.einsum('hqd,hkd->hqk', q_ref[...], k_ref[...],
                   preferred_element_type=jnp.float32) * inv_temp
    s = jnp.where(s >= 0, s, 0.2 * s)                 # leakyReLU(0.2), f32 VPU

    m_prev = m_sc[...]
    m_new = jnp.maximum(m_prev, jnp.max(s, axis=-1, keepdims=True))
    alpha = jnp.exp(m_prev - m_new)
    p = jnp.exp(s - m_new)
    l_sc[...] = alpha * l_sc[...] + jnp.sum(p, axis=-1, keepdims=True)
    acc_sc[...] = alpha * acc_sc[...] + jnp.einsum(
        'hqk,hkd->hqd', p.astype(jnp.bfloat16), v_ref[...],
        preferred_element_type=jnp.float32)
    m_sc[...] = m_new
    # TODO(synk): attn_dropout(0.1) / dropout(0.1) are identity (eval semantics).

    @pl.when(ki == nk - 1)
    def _():
        # Normalize, then fc as a sum over heads: each (tq, dh) @ (dh, d_model)
        # matmul has a lane-dense d_model-wide output and runs once per query
        # tile (not per ki step), so the short dh contraction is amortized.
        # (A single concatenated matmul would need an in-kernel
        #  (n_head, tq, dh) -> (tq, d_feat) relayout; kept simple & robust.)
        o = (acc_sc[...] * pl.reciprocal(l_sc[...], approx=True)).astype(jnp.bfloat16)
        out = jnp.zeros(out_ref.shape, jnp.float32)
        for h in range(n_head):
            out = out + jnp.dot(o[h], fcw_ref[h], preferred_element_type=jnp.float32)
        out_ref[...] = (out + fcb_ref[...] + x_ref[...]).astype(out_ref.dtype)


# ---------------------------------------------------------------------------
# Wrapper.
# ---------------------------------------------------------------------------
def _pick_tile(n, cap=512):
    """Largest multiple of 8 <= cap that divides n; else the full extent."""
    if n <= cap:
        return n
    t = (min(cap, n) // 8) * 8
    while t >= 8:
        if n % t == 0:
            return t
        t -= 8
    return n


def _vmem_limit_bytes():
    """~75% of physical VMEM, capped at 96 MiB (=> ~96 MiB v5e/v6e, ~48 MiB v7x)."""
    try:
        cap = pltpu.get_tpu_info().vmem_capacity_bytes
        return int(min(cap * 3 // 4, 96 * 1024 * 1024))
    except Exception:
        return 64 * 1024 * 1024


def gat_layer_forward(in_feats, params, n_head, d_feat,
                      block_q=None, block_k=None, block_b=None):
    """params: wq, wk, wv (d_model, d_feat) already (in,out); gamma, beta (1, d_model);
    fc_w (d_feat, d_model); fc_b (1, d_model)."""
    B, d_model = in_feats.shape
    assert d_model % n_head == 0
    # GAT_layer.forward reshapes q/k/v of width d_feat into (B, n_head, d_model//n_head),
    # so it implicitly requires d_feat == d_model.
    assert d_feat == d_model, "GAT_layer requires d_feat == d_model"
    dh = d_model // n_head
    inv_temp = float(1.0 / np.power(d_feat, 0.5))

    # Tile selection: key/proj tiles as large as fits (cap 512); query tile
    # additionally clamped so B/tq >= 2 (two query tiles -> v7x megacore use).
    tk = block_k if block_k is not None else _pick_tile(B, 512)
    if block_q is not None:
        tq = block_q
    else:
        cap_q = 512 if B < 16 else min(512, max(8, (B // 2) // 8 * 8))
        tq = _pick_tile(B, cap_q)
    tb = block_b if block_b is not None else _pick_tile(B, 512)
    assert B % tq == 0 and B % tk == 0 and B % tb == 0

    vmem_limit = _vmem_limit_bytes()

    # bf16 weights for the MXU (f32 accumulation in-kernel); QKV fused; fc head-major.
    wqkv = jnp.concatenate([params["wq"], params["wk"], params["wv"]],
                           axis=1).astype(jnp.bfloat16)
    fcw = params["fc_w"].reshape(n_head, dh, d_model).astype(jnp.bfloat16)

    # ---- Pass 1: LayerNorm + QKV projection, exactly once per row ----
    qkv = pl.pallas_call(
        _ln_qkv_proj_kernel,
        out_shape=jax.ShapeDtypeStruct((B, 3 * d_feat), jnp.bfloat16),
        grid_spec=pltpu.PrefetchScalarGridSpec(
            num_scalar_prefetch=0,
            grid=(B // tb,),
            in_specs=[
                pl.BlockSpec((tb, d_model), lambda b: (b, 0)),           # x
                pl.BlockSpec((1, d_model), lambda b: (0, 0)),            # gamma
                pl.BlockSpec((1, d_model), lambda b: (0, 0)),            # beta
                pl.BlockSpec((d_model, 3 * d_feat), lambda b: (0, 0)),   # w_qkv
            ],
            out_specs=pl.BlockSpec((tb, 3 * d_feat), lambda b: (b, 0)),  # lane-dense
        ),
        compiler_params=pltpu.CompilerParams(
            dimension_semantics=("parallel",),
            vmem_limit_bytes=vmem_limit),
    )(in_feats, params["gamma"], params["beta"], wqkv)

    # Wrapper-side layout plumbing (cheap bf16 copies): split + head-major so the
    # attention kernel streams (n_head, tile, dh) blocks with no in-kernel relayout.
    q = qkv[:, :d_feat].reshape(B, n_head, dh).transpose(1, 0, 2)
    k = qkv[:, d_feat:2 * d_feat].reshape(B, n_head, dh).transpose(1, 0, 2)
    v = qkv[:, 2 * d_feat:].reshape(B, n_head, dh).transpose(1, 0, 2)

    # ---- Pass 2: flash-style attention + fc + residual ----
    kernel = functools.partial(_gat_attn_kernel, inv_temp=inv_temp)

    grid_spec = pltpu.PrefetchScalarGridSpec(
        num_scalar_prefetch=0,
        grid=(B // tq, B // tk),              # (query tiles, key tiles) — reduction last
        in_specs=[
            pl.BlockSpec((tq, d_model), lambda qi, ki: (qi, 0)),            # x (residual)
            pl.BlockSpec((n_head, tq, dh), lambda qi, ki: (0, qi, 0)),      # q (bf16)
            pl.BlockSpec((n_head, tk, dh), lambda qi, ki: (0, ki, 0)),      # k (bf16)
            pl.BlockSpec((n_head, tk, dh), lambda qi, ki: (0, ki, 0)),      # v (bf16)
            pl.BlockSpec((n_head, dh, d_model), lambda qi, ki: (0, 0, 0)),  # fc_w head-major
            pl.BlockSpec((1, d_model), lambda qi, ki: (0, 0)),              # fc_b
        ],
        out_specs=pl.BlockSpec((tq, d_model), lambda qi, ki: (qi, 0)),
        scratch_shapes=[
            pltpu.VMEM((n_head, tq, 1), jnp.float32),     # running max  m
            pltpu.VMEM((n_head, tq, 1), jnp.float32),     # running sum  l
            pltpu.VMEM((n_head, tq, dh), jnp.float32),    # output accumulator
        ],
    )

    return pl.pallas_call(
        kernel,
        out_shape=jax.ShapeDtypeStruct((B, d_model), jnp.float32),
        grid_spec=grid_spec,
        compiler_params=pltpu.CompilerParams(
            dimension_semantics=("parallel", "arbitrary"),
            vmem_limit_bytes=vmem_limit),
    )(in_feats, q, k, v, fcw, params["fc_b"])


def _reference(in_feats, params, n_head, d_feat):
    """Pure-JAX f32 reference mirroring the PyTorch forward (eval mode)."""
    B, d_model = in_feats.shape
    dh = d_model // n_head
    temperature = float(np.power(d_feat, 0.5))
    x = in_feats
    mean = jnp.mean(x, -1, keepdims=True)
    var = jnp.mean((x - mean) ** 2, -1, keepdims=True)
    xn = (x - mean) / jnp.sqrt(var + 1e-5) * params["gamma"] + params["beta"]
    q = xn @ params["wq"]
    k = xn @ params["wk"]
    v = xn @ params["wv"]
    q = q.reshape(B, n_head, dh).transpose(1, 0, 2)
    k = k.reshape(B, n_head, dh).transpose(1, 0, 2)
    v = v.reshape(B, n_head, dh).transpose(1, 0, 2)
    attn = jnp.einsum("hbd,hcd->hbc", q, k) / temperature
    attn = jnp.where(attn >= 0, attn, 0.2 * attn)
    attn = jax.nn.softmax(attn, axis=-1)
    out = jnp.einsum("hbc,hcd->hbd", attn, v)
    out = out.transpose(1, 0, 2).reshape(B, d_model)
    out = out @ params["fc_w"] + params["fc_b"]
    return out + x


if __name__ == "__main__":
    # Small shapes consistent with the module (requires d_feat == d_model).
    # block_q/block_k/block_b = 8 force multi-step grids so the online-softmax
    # reduction, accumulator reset and projection tiling are actually exercised.
    B, d_model, d_feat, n_head = 16, 32, 32, 4

    key = jax.random.PRNGKey(0)
    k_x, k_q, k_k, k_v, k_fc = jax.random.split(key, 5)

    std_qkv = np.sqrt(2.0 / (d_model + d_feat))     # nn.init.normal_ std
    std_fc = np.sqrt(2.0 / (d_feat + d_model))      # xavier_normal_ std

    x = jax.random.normal(k_x, (B, d_model), dtype=jnp.float32)
    params = {
        # weights stored (in, out) so the kernels do x @ W
        "wq": std_qkv * jax.random.normal(k_q, (d_model, d_feat), dtype=jnp.float32),
        "wk": std_qkv * jax.random.normal(k_k, (d_model, d_feat), dtype=jnp.float32),
        "wv": std_qkv * jax.random.normal(k_v, (d_model, d_feat), dtype=jnp.float32),
        "gamma": jnp.ones((1, d_model), dtype=jnp.float32),
        "beta": jnp.zeros((1, d_model), dtype=jnp.float32),
        "fc_w": std_fc * jax.random.normal(k_fc, (d_feat, d_model), dtype=jnp.float32),
        "fc_b": jnp.zeros((1, d_model), dtype=jnp.float32),
    }

    fwd = jax.jit(functools.partial(gat_layer_forward, n_head=n_head, d_feat=d_feat,
                                    block_q=8, block_k=8, block_b=8))
    out = fwd(x, params)
    out = jax.block_until_ready(out)

    ref = _reference(x, params, n_head, d_feat)
    # bf16 matmul operands (f32 accumulate) + approx reciprocal => loosened tolerance.
    np.testing.assert_allclose(np.asarray(out), np.asarray(ref), rtol=3e-2, atol=3e-2)

    # TODO(synk): dropout layers (attn_dropout=0.1, dropout=0.1) are identity here
    # (eval-mode semantics); training-mode stochastic dropout is not reproduced.
    print("KERNEL_OK")
</pallas_src>

<mosaic_0001>
module attributes {stable_mosaic.version = 11 : i64} {
  func.func @_ln_qkv_proj_kernel(%arg0: i32, %arg1: memref<8x32xf32, #tpu.memory_space<vmem>>, %arg2: memref<1x32xf32, #tpu.memory_space<vmem>>, %arg3: memref<1x32xf32, #tpu.memory_space<vmem>>, %arg4: memref<32x96xbf16, #tpu.memory_space<vmem>>, %arg5: memref<8x96xbf16, #tpu.memory_space<vmem>>) attributes {dimension_semantics = [#tpu.dimension_semantics<parallel>], iteration_bounds = array<i64: 2>, scalar_prefetch = 0 : i64, scratch_operands = 0 : i64, tpu.core_type = #tpu.core_type<tc>, window_params = [{transform_indices = @transform_0, window_bounds = array<i64: 8, 32>}, {pipeline_mode = #tpu.pipeline_mode<synchronous>, transform_indices = @transform_1, window_bounds = array<i64: 1, 32>}, {pipeline_mode = #tpu.pipeline_mode<synchronous>, transform_indices = @transform_2, window_bounds = array<i64: 1, 32>}, {pipeline_mode = #tpu.pipeline_mode<synchronous>, transform_indices = @transform_3, window_bounds = array<i64: 32, 96>}, {transform_indices = @transform_4, window_bounds = array<i64: 8, 96>}]} {
    %c0 = arith.constant 0 : index
    %c0_0 = arith.constant 0 : index
    %0 = vector.load %arg1[%c0, %c0_0] : memref<8x32xf32, #tpu.memory_space<vmem>>, vector<8x32xf32>
    %cst = arith.constant dense<0.000000e+00> : vector<8xf32>
    %1 = vector.multi_reduction <add>, %0, %cst [1] : vector<8x32xf32> to vector<8xf32>
    %2 = vector.shape_cast %1 : vector<8xf32> to vector<8x1xf32>
    %cst_1 = arith.constant 3.200000e+01 : f32
    %3 = vector.broadcast %cst_1 : f32 to vector<8x1xf32>
    %4 = arith.divf %2, %3 : vector<8x1xf32>
    %5 = vector.broadcast %4 : vector<8x1xf32> to vector<8x32xf32>
    %6 = arith.subf %0, %5 : vector<8x32xf32>
    %7 = arith.mulf %6, %6 : vector<8x32xf32>
    %cst_2 = arith.constant dense<0.000000e+00> : vector<8xf32>
    %8 = vector.multi_reduction <add>, %7, %cst_2 [1] : vector<8x32xf32> to vector<8xf32>
    %9 = vector.shape_cast %8 : vector<8xf32> to vector<8x1xf32>
    %cst_3 = arith.constant 3.200000e+01 : f32
    %10 = vector.broadcast %cst_3 : f32 to vector<8x1xf32>
    %11 = arith.divf %9, %10 : vector<8x1xf32>
    %12 = vector.broadcast %4 : vector<8x1xf32> to vector<8x32xf32>
    %13 = arith.subf %0, %12 : vector<8x32xf32>
    %cst_4 = arith.constant 9.99999974E-6 : f32
    %14 = vector.broadcast %cst_4 : f32 to vector<8x1xf32>
    %15 = arith.addf %11, %14 : vector<8x1xf32>
    %16 = math.rsqrt %15 : vector<8x1xf32>
    %17 = vector.broadcast %16 : vector<8x1xf32> to vector<8x32xf32>
    %18 = arith.mulf %13, %17 : vector<8x32xf32>
    %c0_5 = arith.constant 0 : index
    %c0_6 = arith.constant 0 : index
    %19 = vector.load %arg2[%c0_5, %c0_6] : memref<1x32xf32, #tpu.memory_space<vmem>>, vector<1x32xf32>
    %20 = vector.broadcast %19 : vector<1x32xf32> to vector<8x32xf32>
    %21 = arith.mulf %18, %20 : vector<8x32xf32>
    %c0_7 = arith.constant 0 : index
    %c0_8 = arith.constant 0 : index
    %22 = vector.load %arg3[%c0_7, %c0_8] : memref<1x32xf32, #tpu.memory_space<vmem>>, vector<1x32xf32>
    %23 = vector.broadcast %22 : vector<1x32xf32> to vector<8x32xf32>
    %24 = arith.addf %21, %23 : vector<8x32xf32>
    %25 = arith.truncf %24 : vector<8x32xf32> to vector<8x32xbf16>
    %c0_9 = arith.constant 0 : index
    %c0_10 = arith.constant 0 : index
    %26 = vector.load %arg4[%c0_9, %c0_10] : memref<32x96xbf16, #tpu.memory_space<vmem>>, vector<32x96xbf16>
    %cst_11 = arith.constant dense<0.000000e+00> : vector<8x96xf32>
    %27 = tpu.matmul %25, %26, %cst_11 {dimension_numbers = #tpu.dot_dimension_numbers<[1], [0], [0], [1], [0, 0, 1, 1], [], []>} : vector<8x32xbf16>, vector<32x96xbf16>, vector<8x96xf32> -> vector<8x96xf32>
    %28 = arith.truncf %27 : vector<8x96xf32> to vector<8x96xbf16>
    %c0_12 = arith.constant 0 : index
    %c0_13 = arith.constant 0 : index
    %29 = vector.load %arg5[%c0_12, %c0_13] : memref<8x96xbf16, #tpu.memory_space<vmem>>, vector<8x96xbf16>
    tpu.vector_store %arg5[%c0_12, %c0_13], %28 {strides = array<i32>} : memref<8x96xbf16, #tpu.memory_space<vmem>>, vector<8x96xbf16>,
    return
  }
  func.func @transform_0(%arg0: i32) -> (i32, i32) {
    %c0_i32 = arith.constant 0 : i32
    %c0_i32_0 = arith.constant 0 : i32
    return %arg0, %c0_i32 : i32, i32
  }
  func.func @transform_1(%arg0: i32) -> (i32, i32) {
    %c0_i32 = arith.constant 0 : i32
    %c0_i32_0 = arith.constant 0 : i32
    %c0_i32_1 = arith.constant 0 : i32
    return %c0_i32, %c0_i32_0 : i32, i32
  }
  func.func @transform_2(%arg0: i32) -> (i32, i32) {
    %c0_i32 = arith.constant 0 : i32
    %c0_i32_0 = arith.constant 0 : i32
    %c0_i32_1 = arith.constant 0 : i32
    return %c0_i32, %c0_i32_0 : i32, i32
  }
  func.func @transform_3(%arg0: i32) -> (i32, i32) {
    %c0_i32 = arith.constant 0 : i32
    %c0_i32_0 = arith.constant 0 : i32
    %c0_i32_1 = arith.constant 0 : i32
    return %c0_i32, %c0_i32_0 : i32, i32
  }
  func.func @transform_4(%arg0: i32) -> (i32, i32) {
    %c0_i32 = arith.constant 0 : i32
    %c0_i32_0 = arith.constant 0 : i32
    return %arg0, %c0_i32 : i32, i32
  }
}

module attributes {stable_mosaic.version = 11 : i64} {
  func.func @_gat_attn_kernel(%arg0: i32, %arg1: i32, %arg2: memref<8x32xf32, #tpu.memory_space<vmem>>, %arg3: memref<4x8x8xbf16, #tpu.memory_space<vmem>>, %arg4: memref<4x8x8xbf16, #tpu.memory_space<vmem>>, %arg5: memref<4x8x8xbf16, #tpu.memory_space<vmem>>, %arg6: memref<4x8x32xbf16, #tpu.memory_space<vmem>>, %arg7: memref<1x32xf32, #tpu.memory_space<vmem>>, %arg8: memref<8x32xf32, #tpu.memory_space<vmem>>, %arg9: memref<4x8x1xf32, #tpu.memory_space<vmem>>, %arg10: memref<4x8x1xf32, #tpu.memory_space<vmem>>, %arg11: memref<4x8x8xf32, #tpu.memory_space<vmem>>) attributes {dimension_semantics = [#tpu.dimension_semantics<parallel>, #tpu.dimension_semantics<arbitrary>], iteration_bounds = array<i64: 2, 2>, scalar_prefetch = 0 : i64, scratch_operands = 3 : i64, tpu.core_type = #tpu.core_type<tc>, window_params = [{transform_indices = @transform_0, window_bounds = array<i64: 8, 32>}, {transform_indices = @transform_1, window_bounds = array<i64: 4, 8, 8>}, {transform_indices = @transform_2, window_bounds = array<i64: 4, 8, 8>}, {transform_indices = @transform_3, window_bounds = array<i64: 4, 8, 8>}, {pipeline_mode = #tpu.pipeline_mode<synchronous>, transform_indices = @transform_4, window_bounds = array<i64: 4, 8, 32>}, {pipeline_mode = #tpu.pipeline_mode<synchronous>, transform_indices = @transform_5, window_bounds = array<i64: 1, 32>}, {transform_indices = @transform_6, window_bounds = array<i64: 8, 32>}]} {
    %c0_i32 = arith.constant 0 : i32
    %0 = arith.cmpi eq, %arg1, %c0_i32 : i32
    %1 = arith.extui %0 : i1 to i32
    %c0_i32_0 = arith.constant 0 : i32
    %2 = arith.cmpi ne, %1, %c0_i32_0 : i32
    scf.if %2 {
      %cst_34 = arith.constant 0xFF800000 : f32
      %40 = vector.broadcast %cst_34 : f32 to vector<4x8x1xf32>
      %c0_35 = arith.constant 0 : index
      %c0_36 = arith.constant 0 : index
      %c0_37 = arith.constant 0 : index
      %41 = vector.load %arg9[%c0_35, %c0_36, %c0_37] : memref<4x8x1xf32, #tpu.memory_space<vmem>>, vector<4x8x1xf32>
      tpu.vector_store %arg9[%c0_35, %c0_36, %c0_37], %40 {strides = array<i32>} : memref<4x8x1xf32, #tpu.memory_space<vmem>>, vector<4x8x1xf32>,
      %cst_38 = arith.constant 0.000000e+00 : f32
      %42 = vector.broadcast %cst_38 : f32 to vector<4x8x1xf32>
      %c0_39 = arith.constant 0 : index
      %c0_40 = arith.constant 0 : index
      %c0_41 = arith.constant 0 : index
      %43 = vector.load %arg10[%c0_39, %c0_40, %c0_41] : memref<4x8x1xf32, #tpu.memory_space<vmem>>, vector<4x8x1xf32>
      tpu.vector_store %arg10[%c0_39, %c0_40, %c0_41], %42 {strides = array<i32>} : memref<4x8x1xf32, #tpu.memory_space<vmem>>, vector<4x8x1xf32>,
      %cst_42 = arith.constant 0.000000e+00 : f32
      %44 = vector.broadcast %cst_42 : f32 to vector<4x8x8xf32>
      %c0_43 = arith.constant 0 : index
      %c0_44 = arith.constant 0 : index
      %c0_45 = arith.constant 0 : index
      %45 = vector.load %arg11[%c0_43, %c0_44, %c0_45] : memref<4x8x8xf32, #tpu.memory_space<vmem>>, vector<4x8x8xf32>
      tpu.vector_store %arg11[%c0_43, %c0_44, %c0_45], %44 {strides = array<i32>} : memref<4x8x8xf32, #tpu.memory_space<vmem>>, vector<4x8x8xf32>,
    } else {
    }
    %c0 = arith.constant 0 : index
    %c0_1 = arith.constant 0 : index
    %c0_2 = arith.constant 0 : index
    %3 = vector.load %arg3[%c0, %c0_1, %c0_2] : memref<4x8x8xbf16, #tpu.memory_space<vmem>>, vector<4x8x8xbf16>
    %c0_3 = arith.constant 0 : index
    %c0_4 = arith.constant 0 : index
    %c0_5 = arith.constant 0 : index
    %4 = vector.load %arg4[%c0_3, %c0_4, %c0_5] : memref<4x8x8xbf16, #tpu.memory_space<vmem>>, vector<4x8x8xbf16>
    "tpu.trace_start"() <{level = 10 : i32, message = "hqd,hkd->hqk"}> : () -> ()
    %cst = arith.constant dense<0.000000e+00> : vector<4x8x8xf32>
    %5 = tpu.matmul %3, %4, %cst {dimension_numbers = #tpu.dot_dimension_numbers<[2], [2], [1], [1], [0, 0, 0, 1, 1, 1], [0], [0]>} : vector<4x8x8xbf16>, vector<4x8x8xbf16>, vector<4x8x8xf32> -> vector<4x8x8xf32>
    "tpu.trace_stop"() : () -> ()
    %cst_6 = arith.constant 0.176776692 : f32
    %6 = vector.broadcast %cst_6 : f32 to vector<4x8x8xf32>
    %7 = arith.mulf %5, %6 : vector<4x8x8xf32>
    %cst_7 = arith.constant 0.000000e+00 : f32
    %8 = vector.broadcast %cst_7 : f32 to vector<4x8x8xf32>
    %9 = arith.cmpf oge, %7, %8 : vector<4x8x8xf32>
    %cst_8 = arith.constant 2.000000e-01 : f32
    %10 = vector.broadcast %cst_8 : f32 to vector<4x8x8xf32>
    %11 = arith.mulf %10, %7 : vector<4x8x8xf32>
    %12 = arith.select %9, %7, %11 : vector<4x8x8xi1>, vector<4x8x8xf32>
    %c0_9 = arith.constant 0 : index
    %c0_10 = arith.constant 0 : index
    %c0_11 = arith.constant 0 : index
    %13 = vector.load %arg9[%c0_9, %c0_10, %c0_11] : memref<4x8x1xf32, #tpu.memory_space<vmem>>, vector<4x8x1xf32>
    %cst_12 = arith.constant dense<0xFF800000> : vector<4x8xf32>
    %14 = vector.multi_reduction <maximumf>, %12, %cst_12 [2] : vector<4x8x8xf32> to vector<4x8xf32>
    %15 = vector.shape_cast %14 : vector<4x8xf32> to vector<4x8x1xf32>
    %16 = arith.maximumf %13, %15 : vector<4x8x1xf32>
    %17 = arith.subf %13, %16 : vector<4x8x1xf32>
    %18 = math.exp %17 : vector<4x8x1xf32>
    %19 = vector.broadcast %16 : vector<4x8x1xf32> to vector<4x8x8xf32>
    %20 = arith.subf %12, %19 : vector<4x8x8xf32>
    %21 = math.exp %20 : vector<4x8x8xf32>
    %c0_13 = arith.constant 0 : index
    %c0_14 = arith.constant 0 : index
    %c0_15 = arith.constant 0 : index
    %22 = vector.load %arg10[%c0_13, %c0_14, %c0_15] : memref<4x8x1xf32, #tpu.memory_space<vmem>>, vector<4x8x1xf32>
    %23 = arith.mulf %18, %22 : vector<4x8x1xf32>
    %cst_16 = arith.constant dense<0.000000e+00> : vector<4x8xf32>
    %24 = vector.multi_reduction <add>, %21, %cst_16 [2] : vector<4x8x8xf32> to vector<4x8xf32>
    %25 = vector.shape_cast %24 : vector<4x8xf32> to vector<4x8x1xf32>
    %26 = arith.addf %23, %25 : vector<4x8x1xf32>
    %c0_17 = arith.constant 0 : index
    %c0_18 = arith.constant 0 : index
    %c0_19 = arith.constant 0 : index
    %27 = vector.load %arg10[%c0_17, %c0_18, %c0_19] : memref<4x8x1xf32, #tpu.memory_space<vmem>>, vector<4x8x1xf32>
    tpu.vector_store %arg10[%c0_17, %c0_18, %c0_19], %26 {strides = array<i32>} : memref<4x8x1xf32, #tpu.memory_space<vmem>>, vector<4x8x1xf32>,
    %c0_20 = arith.constant 0 : index
    %c0_21 = arith.constant 0 : index
    %c0_22 = arith.constant 0 : index
    %28 = vector.load %arg11[%c0_20, %c0_21, %c0_22] : memref<4x8x8xf32, #tpu.memory_space<vmem>>, vector<4x8x8xf32>
    %29 = vector.broadcast %18 : vector<4x8x1xf32> to vector<4x8x8xf32>
    %30 = arith.mulf %29, %28 : vector<4x8x8xf32>
    %31 = arith.truncf %21 : vector<4x8x8xf32> to vector<4x8x8xbf16>
    %c0_23 = arith.constant 0 : index
    %c0_24 = arith.constant 0 : index
    %c0_25 = arith.constant 0 : index
    %32 = vector.load %arg5[%c0_23, %c0_24, %c0_25] : memref<4x8x8xbf16, #tpu.memory_space<vmem>>, vector<4x8x8xbf16>
    "tpu.trace_start"() <{level = 10 : i32, message = "hqk,hkd->hqd"}> : () -> ()
    %cst_26 = arith.constant dense<0.000000e+00> : vector<4x8x8xf32>
    %33 = tpu.matmul %31, %32, %cst_26 {dimension_numbers = #tpu.dot_dimension_numbers<[2], [1], [1], [2], [0, 0, 0, 1, 1, 2], [0], [0]>} : vector<4x8x8xbf16>, vector<4x8x8xbf16>, vector<4x8x8xf32> -> vector<4x8x8xf32>
    "tpu.trace_stop"() : () -> ()
    %34 = arith.addf %30, %33 : vector<4x8x8xf32>
    %c0_27 = arith.constant 0 : index
    %c0_28 = arith.constant 0 : index
    %c0_29 = arith.constant 0 : index
    %35 = vector.load %arg11[%c0_27, %c0_28, %c0_29] : memref<4x8x8xf32, #tpu.memory_space<vmem>>, vector<4x8x8xf32>
    tpu.vector_store %arg11[%c0_27, %c0_28, %c0_29], %34 {strides = array<i32>} : memref<4x8x8xf32, #tpu.memory_space<vmem>>, vector<4x8x8xf32>,
    %c0_30 = arith.constant 0 : index
    %c0_31 = arith.constant 0 : index
    %c0_32 = arith.constant 0 : index
    %36 = vector.load %arg9[%c0_30, %c0_31, %c0_32] : memref<4x8x1xf32, #tpu.memory_space<vmem>>, vector<4x8x1xf32>
    tpu.vector_store %arg9[%c0_30, %c0_31, %c0_32], %16 {strides = array<i32>} : memref<4x8x1xf32, #tpu.memory_space<vmem>>, vector<4x8x1xf32>,
    %c1_i32 = arith.constant 1 : i32
    %37 = arith.cmpi eq, %arg1, %c1_i32 : i32
    %38 = arith.extui %37 : i1 to i32
    %c0_i32_33 = arith.constant 0 : i32
    %39 = arith.cmpi ne, %38, %c0_i32_33 : i32
    scf.if %39 {
      %c0_34 = arith.constant 0 : index
      %c0_35 = arith.constant 0 : index
      %c0_36 = arith.constant 0 : index
      %40 = vector.load %arg11[%c0_34, %c0_35, %c0_36] : memref<4x8x8xf32, #tpu.memory_space<vmem>>, vector<4x8x8xf32>
      %c0_37 = arith.constant 0 : index
      %c0_38 = arith.constant 0 : index
      %c0_39 = arith.constant 0 : index
      %41 = vector.load %arg10[%c0_37, %c0_38, %c0_39] : memref<4x8x1xf32, #tpu.memory_space<vmem>>, vector<4x8x1xf32>
      %42 = tpu.reciprocal %41 {approx = true} : vector<4x8x1xf32> -> vector<4x8x1xf32>
      %43 = vector.broadcast %42 : vector<4x8x1xf32> to vector<4x8x8xf32>
      %44 = arith.mulf %40, %43 : vector<4x8x8xf32>
      %45 = arith.truncf %44 : vector<4x8x8xf32> to vector<4x8x8xbf16>
      %cst_40 = arith.constant 0.000000e+00 : f32
      %46 = vector.broadcast %cst_40 : f32 to vector<8x32xf32>
      %47 = vector.extract_strided_slice %45 {offsets = [0, 0, 0], sizes = [1, 8, 8], strides = [1, 1, 1]} : vector<4x8x8xbf16> to vector<1x8x8xbf16>
      %48 = vector.shape_cast %47 : vector<1x8x8xbf16> to vector<8x8xbf16>
      %c0_41 = arith.constant 0 : index
      %c0_42 = arith.constant 0 : index
      %c0_43 = arith.constant 0 : index
      %49 = vector.load %arg6[%c0_41, %c0_42, %c0_43] : memref<4x8x32xbf16, #tpu.memory_space<vmem>>, vector<1x8x32xbf16>
      %50 = vector.shape_cast %49 : vector<1x8x32xbf16> to vector<8x32xbf16>
      %cst_44 = arith.constant dense<0.000000e+00> : vector<8x32xf32>
      %51 = tpu.matmul %48, %50, %cst_44 {dimension_numbers = #tpu.dot_dimension_numbers<[1], [0], [0], [1], [0, 0, 1, 1], [], []>} : vector<8x8xbf16>, vector<8x32xbf16>, vector<8x32xf32> -> vector<8x32xf32>
      %52 = arith.addf %46, %51 : vector<8x32xf32>
      %53 = vector.extract_strided_slice %45 {offsets = [1, 0, 0], sizes = [1, 8, 8], strides = [1, 1, 1]} : vector<4x8x8xbf16> to vector<1x8x8xbf16>
      %54 = vector.shape_cast %53 : vector<1x8x8xbf16> to vector<8x8xbf16>
      %c1 = arith.constant 1 : index
      %c0_45 = arith.constant 0 : index
      %c0_46 = arith.constant 0 : index
      %55 = vector.load %arg6[%c1, %c0_45, %c0_46] : memref<4x8x32xbf16, #tpu.memory_space<vmem>>, vector<1x8x32xbf16>
      %56 = vector.shape_cast %55 : vector<1x8x32xbf16> to vector<8x32xbf16>
      %cst_47 = arith.constant dense<0.000000e+00> : vector<8x32xf32>
      %57 = tpu.matmul %54, %56, %cst_47 {dimension_numbers = #tpu.dot_dimension_numbers<[1], [0], [0], [1], [0, 0, 1, 1], [], []>} : vector<8x8xbf16>, vector<8x32xbf16>, vector<8x32xf32> -> vector<8x32xf32>
      %58 = arith.addf %52, %57 : vector<8x32xf32>
      %59 = vector.extract_strided_slice %45 {offsets = [2, 0, 0], sizes = [1, 8, 8], strides = [1, 1, 1]} : vector<4x8x8xbf16> to vector<1x8x8xbf16>
      %60 = vector.shape_cast %59 : vector<1x8x8xbf16> to vector<8x8xbf16>
      %c2 = arith.constant 2 : index
      %c0_48 = arith.constant 0 : index
      %c0_49 = arith.constant 0 : index
      %61 = vector.load %arg6[%c2, %c0_48, %c0_49] : memref<4x8x32xbf16, #tpu.memory_space<vmem>>, vector<1x8x32xbf16>
      %62 = vector.shape_cast %61 : vector<1x8x32xbf16> to vector<8x32xbf16>
      %cst_50 = arith.constant dense<0.000000e+00> : vector<8x32xf32>
      %63 = tpu.matmul %60, %62, %cst_50 {dimension_numbers = #tpu.dot_dimension_numbers<[1], [0], [0], [1], [0, 0, 1, 1], [], []>} : vector<8x8xbf16>, vector<8x32xbf16>, vector<8x32xf32> -> vector<8x32xf32>
      %64 = arith.addf %58, %63 : vector<8x32xf32>
      %65 = vector.extract_strided_slice %45 {offsets = [3, 0, 0], sizes = [1, 8, 8], strides = [1, 1, 1]} : vector<4x8x8xbf16> to vector<1x8x8xbf16>
      %66 = vector.shape_cast %65 : vector<1x8x8xbf16> to vector<8x8xbf16>
      %c3 = arith.constant 3 : index
      %c0_51 = arith.constant 0 : index
      %c0_52 = arith.constant 0 : index
      %67 = vector.load %arg6[%c3, %c0_51, %c0_52] : memref<4x8x32xbf16, #tpu.memory_space<vmem>>, vector<1x8x32xbf16>
      %68 = vector.shape_cast %67 : vector<1x8x32xbf16> to vector<8x32xbf16>
      %cst_53 = arith.constant dense<0.000000e+00> : vector<8x32xf32>
      %69 = tpu.matmul %66, %68, %cst_53 {dimension_numbers = #tpu.dot_dimension_numbers<[1], [0], [0], [1], [0, 0, 1, 1], [], []>} : vector<8x8xbf16>, vector<8x32xbf16>, vector<8x32xf32> -> vector<8x32xf32>
      %70 = arith.addf %64, %69 : vector<8x32xf32>
      %c0_54 = arith.constant 0 : index
      %c0_55 = arith.constant 0 : index
      %71 = vector.load %arg7[%c0_54, %c0_55] : memref<1x32xf32, #tpu.memory_space<vmem>>, vector<1x32xf32>
      %72 = vector.broadcast %71 : vector<1x32xf32> to vector<8x32xf32>
      %73 = arith.addf %70, %72 : vector<8x32xf32>
      %c0_56 = arith.constant 0 : index
      %c0_57 = arith.constant 0 : index
      %74 = vector.load %arg2[%c0_56, %c0_57] : memref<8x32xf32, #tpu.memory_space<vmem>>, vector<8x32xf32>
      %75 = arith.addf %73, %74 : vector<8x32xf32>
      %c0_58 = arith.constant 0 : index
      %c0_59 = arith.constant 0 : index
      %76 = vector.load %arg8[%c0_58, %c0_59] : memref<8x32xf32, #tpu.memory_space<vmem>>, vector<8x32xf32>
      tpu.vector_store %arg8[%c0_58, %c0_59], %75 {strides = array<i32>} : memref<8x32xf32, #tpu.memory_space<vmem>>, vector<8x32xf32>,
    } else {
    }
    return
  }
  func.func @transform_0(%arg0: i32, %arg1: i32) -> (i32, i32) {
    %c0_i32 = arith.constant 0 : i32
    %c0_i32_0 = arith.constant 0 : i32
    return %arg0, %c0_i32 : i32, i32
  }
  func.func @transform_1(%arg0: i32, %arg1: i32) -> (i32, i32, i32) {
    %c0_i32 = arith.constant 0 : i32
    %c0_i32_0 = arith.constant 0 : i32
    %c0_i32_1 = arith.constant 0 : i32
    return %c0_i32, %arg0, %c0_i32_0 : i32, i32, i32
  }
  func.func @transform_2(%arg0: i32, %arg1: i32) -> (i32, i32, i32) {
    %c0_i32 = arith.constant 0 : i32
    %c0_i32_0 = arith.constant 0 : i32
    %c0_i32_1 = arith.constant 0 : i32
    return %c0_i32, %arg1, %c0_i32_0 : i32, i32, i32
  }
  func.func @transform_3(%arg0: i32, %arg1: i32) -> (i32, i32, i32) {
    %c0_i32 = arith.constant 0 : i32
    %c0_i32_0 = arith.constant 0 : i32
    %c0_i32_1 = arith.constant 0 : i32
    return %c0_i32, %arg1, %c0_i32_0 : i32, i32, i32
  }
  func.func @transform_4(%arg0: i32, %arg1: i32) -> (i32, i32, i32) {
    %c0_i32 = arith.constant 0 : i32
    %c0_i32_0 = arith.constant 0 : i32
    %c0_i32_1 = arith.constant 0 : i32
    %c0_i32_2 = arith.constant 0 : i32
    return %c0_i32, %c0_i32_0, %c0_i32_1 : i32, i32, i32
  }
  func.func @transform_5(%arg0: i32, %arg1: i32) -> (i32, i32) {
    %c0_i32 = arith.constant 0 : i32
    %c0_i32_0 = arith.constant 0 : i32
    %c0_i32_1 = arith.constant 0 : i32
    return %c0_i32, %c0_i32_0 : i32, i32
  }
  func.func @transform_6(%arg0: i32, %arg1: i32) -> (i32, i32) {
    %c0_i32 = arith.constant 0 : i32
    %c0_i32_0 = arith.constant 0 : i32
    return %arg0, %c0_i32 : i32, i32
  }
}

</mosaic_0001>

<bundles_post_ra>
// kernel: gat_layer_forward.2
= control target key start
LH: loop header
LB: loop body
LE: loop exit
PB: predicated region body
PF: predicated region fallthrough
CT: control target
= control target key end

     0   :  { %s416_s15 = smov 0   ;;  %s452_s0 = inlined_call_operand.vmem [shape: f32[16,32], index: 0, kind: input, shape index: {}]   ;;  %s453_s1 = inlined_call_operand.vmem [shape: f32[1,32], index: 1, kind: input, shape index: {}]   ;;  %s454_s2 = inlined_call_operand.vmem [shape: f32[1,32], index: 2, kind: input, shape index: {}]   ;;  %s455_s3 = inlined_call_operand.vmem [shape: bf16[32,96], index: 3, kind: input, shape index: {}]   ;;  %s456_s4 = inlined_call_operand.vmem [shape: bf16[16,96], index: 4, kind: output, shape index: {}]  }
   0x1 LB: > { %s342_s16 = sadd.s32 4294967295, %s387_s15   ;;  %p346_p0 = scmp.ge.s32.totalorder %s387_s15, 1  ;;  %s387_s15 = sphi %s416_s15, %s14_s15  }
   0x2   : > { %p161_p1 = scmp.lt.s32.totalorder %s387_s15, 3 }
   0x4   : > { %p162_p2 = pnand %p346_p0, %p161_p1 }
   0x5   : > { %p185_p3 = scmp.lt.s32.totalorder (!%p162_p2), %s342_s16, 1 }
   0x6   : > { %165 = sbr.rel (%p162_p2) target bundleno = 524 (0x20c), region = 36 }
   0xb   : > { %s458_s16 = smov (!%p185_p3, %s342_s16), 1  ;;  %vm195_vm0 = vcmask 261120   ;;  %v377_v7 = vld [vmem:[%s455_s3 + $0x8] sm:$0xff]   ;;  %v389_v8 = vmov 0.0   ;;  %vm390_vm1 = vmmov 0   ;;  %v378_v9 = vld [vmem:[%s455_s3] sm:$0xff]  }
   0xc   : > { %s347_s17 = sshll.u32 %s458_s16, 3  ;;  %359 = vmatprep.subr.bf16.mxu0 %v389_v8  ;;  %363 = vmatprep.mubr.msk.bf16.mxu0 %vm390_vm1, %v389_v8  ;;  %v349_v14 = vld [vmem:[%s453_s1] ss:$0 sm:$0xff]  ;;  %s348_s29 = sshll.u32 %s458_s16, 2  ;;  %vm287_vm2 = vcmask 781312  }
   0xd   : > { %s188_s20 = scalar_lea.vmem %s452_s0, %s347_s17  ;;  %360 = vmatpush3.bf16.msra.mxu0 %v377_v7  ;;  %v350_v16 = vld [vmem:[%s454_s2] ss:$0 sm:$0xff]  ;;  %s192_s6 = scalar_lea.vmem %s456_s4, %s348_s29 }
   0xe   : > { %v194_v0 = vld [vmem:[%s188_s20] sm:$0xff]  ;;  %361 = vmatprep.subr.bf16.mxu0 %v389_v8 }
   0xf   : > { %v196_v1 = vsel %vm195_vm0, %v194_v0, 0.0 }
  0x10   : > { %197 = vadd.xlane.f32.xlu0 %v196_v1 }
  0x11   : > { %362 = vmatpush3.bf16.msra.mxu0 %v378_v9 }
  0x99   : > { %v198_v2 = vpop.xlane.xlu0 %197 }
  0x9a   : > { %v200_v3 = vmul.f32 0.03125, %v198_v2 }
  0x9c   : > { %v201_v4 = vsub.f32 %v194_v0, %v200_v3 }
  0x9e   : > { %v202_v5 = vmul.f32 %v201_v4, %v201_v4 }
  0xa0   : > { %v203_v6 = vsel %vm195_vm0, %v202_v5, 0.0 }
  0xa1   : > { %204 = vadd.xlane.f32.xlu0 %v203_v6 }
 0x12a   : > { %v205_v10 = vpop.xlane.xlu0 %204 }
 0x12b   : > { %v206_v11 = vmul.f32 0.03125, %v205_v10 }
 0x12d   : > { %v207_v12 = vadd.f32 1e-05, %v206_v11 }
 0x12f   : > { %379 = vrsqrt.f32 %v207_v12 }
 0x13c   : > { %v380_v13 = vpop.eup %379 }
 0x13d   : > { %v209_v15 = vmul.f32 %v380_v13, %v201_v4 }
 0x13f   : > { %v217_v17 = vmul.f32 %v349_v14, %v209_v15 }
 0x141   : > { %v225_v18 = vadd.f32 %v350_v16, %v217_v17 }
 0x143   : > { %v226_v19 = vpack.c.bf16 %v225_v18, %v225_v18 }
 0x145   : > { %364 = vmatmul.mubr.msk.bf16.vlgmr.msra.gmra.mxu0 %vm195_vm0, %v226_v19 }
 0x205   : > { %v280_v20 = vpop.f32.mrf.mxu0 }
 0x206   : > { %v286_v21 = vpack.c.bf16 %v280_v20, %v280_v20 }
 0x207   : > { %v365_v22 = vpop.f32.mrf.mxu0 }
 0x208   : > { %288 = vst.msk [vmem:[%s192_s6] sm:$0xf] %vm287_vm2, %v286_v21 }
 0x209   : > { %v283_v23 = vpop.f32.mrf.mxu0 }
 0x20b   : > { %v366_v24 = vpop.f32.mrf.mxu0 }
 0x20c PF: > { %s14_s15 = sadd.s32 1, %s387_s15  }
 0x20d   : > { %p11_p4 = scmp.ge.s32.totalorder %s14_s15, 4  }
 0x20f   :  { %13 = sbr.rel (!%p11_p4) target bundleno = 1 (0x1), region = 66 }

// kernel: gat_layer_forward.3
= control target key start
LH: loop header
LB: loop body
LE: loop exit
PB: predicated region body
PF: predicated region fallthrough
CT: control target
= control target key end

     0   :  { %s2165_s0 = inlined_call_operand.vmem [shape: f32[16,32], index: 0, kind: input, shape index: {}]   ;;  %s2166_s1 = inlined_call_operand.vmem [shape: bf16[4,16,8], index: 1, kind: input, shape index: {}]   ;;  %s2167_s2 = inlined_call_operand.vmem [shape: bf16[4,16,8], index: 2, kind: input, shape index: {}]   ;;  %s2168_s3 = inlined_call_operand.vmem [shape: bf16[4,16,8], index: 3, kind: input, shape index: {}]   ;;  %s2169_s4 = inlined_call_operand.vmem [shape: bf16[4,8,32], index: 4, kind: input, shape index: {}]   ;;  %s2170_s5 = inlined_call_operand.vmem [shape: f32[1,32], index: 5, kind: input, shape index: {}]   ;;  %s2171_s6 = inlined_call_operand.hbm [shape: f32[16,32], index: 6, kind: output, shape index: {}]  }
   0x1   :  { %2175 = sst [smem:[#allocation14_spill]] %s2166_s1 }
   0x2   :  { %2176 = sst [smem:[#allocation15_spill]] %s2167_s2 }
   0x3   :  { %2177 = sst [smem:[#allocation16_spill]] %s2168_s3 }
   0x4   :  { %11 = vsyncpa [#allocation9], 0 }
   0x5   :  { %13 = vsyncpa [#allocation9 + $0x1], 0  ;;  %s1836_s21 = smov 0   ;;  %s1838_s22 = smov 0  }
   0x6   :  { %s1840_s23 = smov 0   ;;  %s1842_s24 = smov 0  }
   0x7   :  { %s1844_s25 = smov 0   ;;  %s1846_s26 = smov 0  }
   0x8   :  { %s1848_s27 = smov 0   ;;  %s1850_s28 = smov 0  }
   0x9   :  { %s1852_s29 = smov 0   ;;  %s1854_s30 = smov 0  }
   0xa LB: > { %2178 = sst [smem:[#allocation11_spill]] %s1786_s29  ;;  %s1425_s7 = sadd.s32 4294967295, %s1790_s30   ;;  %s1790_s30 = sphi %s1854_s30, %s19_s30   ;;  %s1786_s29 = sphi %s1852_s29, %s2190_s29   ;;  %s1782_s28 = sphi %s1850_s28, %s2197_s28   ;;  %s1778_s27 = sphi %s1848_s27, %s2188_s27   ;;  %s1774_s26 = sphi %s1846_s26, %s2196_s26   ;;  %s1770_s25 = sphi %s1844_s25, %s2195_s25   ;;  %s1766_s24 = sphi %s1842_s24, %s2194_s24   ;;  %s1762_s23 = sphi %s1840_s23, %s2193_s23   ;;  %s1758_s22 = sphi %s1838_s22, %s2192_s22   ;;  %s1754_s21 = sphi %s1836_s21, %s2191_s21  }
   0xb   : > { %s1426_s8 = sadd.s32 4294967294, %s1790_s30   ;;  %s28_s9 = sadd.s32 1, %s1782_s28 }
   0xc   : > { %s31_s10 = sadd.s32 1, %s1786_s29  ;;  %p29_p0 = scmp.ge.s32.totalorder %s28_s9, 2 }
   0xd   : > { %s64_s11 = sadd.s32 1, %s1770_s25  ;;  %p71_p1 = scmp.ne.s32.totalorder %s1770_s25, %s1766_s24 }
   0xe   : > { %p72_p2 = scmp.eq.s32.totalorder %s1790_s30, 0  ;;  %s2199_s9 = smov (%p29_p0, %s28_s9), 0 }
   0xf   : > { %2179 = sst [smem:[#allocation12_spill]] %s2199_s9  ;;  %s2201_s10 = smov (!%p29_p0, %s31_s10), %s1786_s29 }
  0x10   : > { %p1900_p3 = por %p72_p2, %p71_p1  ;;  %s87_s13 = ssub.s32 %s1782_s28, %s2199_s9 }
  0x11   : > { %p33_p4 = scmp.ge.s32.totalorder %s2201_s10, 2  ;;  %p88_p5 = scmp.eq.s32.totalorder %s87_s13, 0 }
  0x12   : > { %s90_s14 = sadd.s32 1, %s1762_s23  ;;  %p97_p6 = scmp.ne.s32.totalorder %s1762_s23, %s1758_s22 }
  0x13   : > { %s2203_s10 = smov (%p33_p4, %s2201_s10), 0  ;;  %p195_p9 = scmp.eq.s32.totalorder %s1425_s7, 3 }
  0x14   : > { %2181 = sst [smem:[#allocation13_spill]] %s2203_s10  ;;  %s61_s16 = ssub.s32 %s1786_s29, %s2203_s10 }
  0x15   : > { %s1912_s15 = scalar_select %p88_p5, %s1762_s23, %s90_s14  }
  0x16   : > { %p1916_p7 = por %p97_p6, %p72_p2  ;;  %p62_p8 = scmp.eq.s32.totalorder %s61_s16, 0 }
  0x17   : > { %p200_p10 = scmp.ne.s32.totalorder %s1766_s24, %s1754_s21  ;;  %p201_p11 = scmp.eq.s32.totalorder %s1426_s8, 3 }
  0x18   : > { %s1923_s18 = scalar_select %p62_p8, %s1770_s25, %s64_s11  }
  0x19   : > { %p1928_p12 = por %p195_p9, %p71_p1  ;;  %p1932_p13 = por %p201_p11, %p200_p10 }
  0x1a   : > { %p1428_p0 = scmp.ge.s32.totalorder %s1790_s30, 4 }
  0x1c   : > { %223 = sbr.rel (%p1428_p0) target bundleno = 69 (0x45), region = 24 }
  0x21   : > { %233 = sbr.rel (!%p1900_p3) target bundleno = 45 (0x2d), region = 32  ;;  %s235_s7 = sand.u32 (%p1900_p3), 1, %s1770_s25  }
  0x22   : > { %s1430_s8 = sshll.u32 (%p1900_p3), %s1786_s29, 2  ;;  %s1429_s11 = sshll.u32 (%p1900_p3), %s235_s7, 4 }
  0x23   : > { %s2185_s1 = sld [smem:[#allocation14_spill]] (%p1900_p3)  ;;  %s237_s10 = scalar_lea.vmem (%p1900_p3), [#allocation5], %s1429_s11 }
  0x29   : > { %s239_s16 = scalar_lea.vmem %s2185_s1, %s1430_s8 }
  0x2a   : > { %v256_v0 = vld [vmem:[%s239_s16] sm:$0xf]  ;;  %v258_v1 = vld [vmem:[%s239_s16 + $0x8] sm:$0xf]  ;;  %v260_v2 = vld [vmem:[%s239_s16 + $0x10] sm:$0xf] }
  0x2b   : > { %257 = vst [vmem:[%s237_s10] sm:$0xf] %v256_v0  ;;  %259 = vst [vmem:[%s237_s10 + $0x4] sm:$0xf] %v258_v1  ;;  %v262_v3 = vld [vmem:[%s239_s16 + $0x18] sm:$0xf] }
  0x2c   : > { %261 = vst [vmem:[%s237_s10 + $0x8] sm:$0xf] %v260_v2  ;;  %263 = vst [vmem:[%s237_s10 + $0xc] sm:$0xf] %v262_v3 }
  0x2d PF: > { %295 = sbr.rel (!%p1916_p7) target bundleno = 57 (0x39), region = 73  ;;  %s297_s12 = sand.u32 (%p1916_p7), 1, %s1762_s23  }
  0x2e   : > { %s1432_s7 = sshll.u32 (%p1916_p7), %s1782_s28, 2  ;;  %s1431_s9 = sshll.u32 (%p1916_p7), %s297_s12, 4 }
  0x2f   : > { %s2186_s2 = sld [smem:[#allocation15_spill]] (%p1916_p7)  ;;  %s299_s11 = scalar_lea.vmem (%p1916_p7), [#allocation6], %s1431_s9 }
  0x35   : > { %s301_s14 = scalar_lea.vmem %s2186_s2, %s1432_s7 }
  0x36   : > { %v318_v4 = vld [vmem:[%s301_s14] sm:$0xf]  ;;  %v320_v5 = vld [vmem:[%s301_s14 + $0x8] sm:$0xf]  ;;  %v322_v6 = vld [vmem:[%s301_s14 + $0x10] sm:$0xf] }
  0x37   : > { %319 = vst [vmem:[%s299_s11] sm:$0xf] %v318_v4  ;;  %321 = vst [vmem:[%s299_s11 + $0x4] sm:$0xf] %v320_v5  ;;  %v324_v7 = vld [vmem:[%s301_s14 + $0x18] sm:$0xf] }
  0x38   : > { %323 = vst [vmem:[%s299_s11 + $0x8] sm:$0xf] %v322_v6  ;;  %325 = vst [vmem:[%s299_s11 + $0xc] sm:$0xf] %v324_v7 }
  0x39 PF: > { %357 = sbr.rel (!%p1916_p7) target bundleno = 69 (0x45), region = 114  ;;  %s359_s10 = sand.u32 (%p1916_p7), 1, %s1762_s23  }
  0x3a   : > { %s1434_s16 = sshll.u32 (%p1916_p7), %s1782_s28, 2  ;;  %s1433_s12 = sshll.u32 (%p1916_p7), %s359_s10, 4 }
  0x3b   : > { %s2187_s3 = sld [smem:[#allocation16_spill]] (%p1916_p7)  ;;  %s361_s9 = scalar_lea.vmem (%p1916_p7), [#allocation7], %s1433_s12 }
  0x41   : > { %s363_s8 = scalar_lea.vmem %s2187_s3, %s1434_s16 }
  0x42   : > { %v380_v8 = vld [vmem:[%s363_s8] sm:$0xf]  ;;  %v382_v9 = vld [vmem:[%s363_s8 + $0x8] sm:$0xf]  ;;  %v384_v10 = vld [vmem:[%s363_s8 + $0x10] sm:$0xf] }
  0x43   : > { %381 = vst [vmem:[%s361_s9] sm:$0xf] %v380_v8  ;;  %383 = vst [vmem:[%s361_s9 + $0x4] sm:$0xf] %v382_v9  ;;  %v386_v11 = vld [vmem:[%s363_s8 + $0x18] sm:$0xf] }
  0x44   : > { %385 = vst [vmem:[%s361_s9 + $0x8] sm:$0xf] %v384_v10  ;;  %387 = vst [vmem:[%s361_s9 + $0xc] sm:$0xf] %v386_v11 }
  0x45 PF: > { %p1435_p1 = scmp.ge.s32.totalorder %s1790_s30, 1  ;;  %p418_p2 = scmp.lt.s32.totalorder %s1790_s30, 5 }
  0x47   : > { %p419_p3 = pnand %p1435_p1, %p418_p2 }
  0x48   : > { %s1961_s17 = sand.u32 (!%p419_p3), 1, %s1766_s24   ;;  %s432_s14 = sand.u32 (!%p419_p3), 1, %s1758_s22  }
  0x49   : > { %422 = sbr.rel (%p419_p3) target bundleno = 1172 (0x494), region = 155  ;;  %s1436_s11 = sshll.u32 (!%p419_p3), %s1961_s17, 4 }
  0x4a   : > { %s1437_s10 = sshll.u32 (!%p419_p3), %s432_s14, 4  ;;  %s1439_s16 = sshll.u32 (!%p419_p3), %s1961_s17, 3 }
  0x4b   : > { %p480_p4 = scmp.lt.s32.totalorder (!%p419_p3), %s1778_s27, 1  ;;  %s1973_s1 = scalar_lea.vmem (!%p419_p3), [#allocation5], %s1436_s11 }
  0x4c   : > { %s1975_s2 = scalar_lea.vmem (!%p419_p3), [#allocation6], %s1437_s10  ;;  %s1977_s3 = scalar_lea.vmem (!%p419_p3), [#allocation7], %s1437_s10 }
  0x4d   : > { %s1979_s29 = scalar_lea.vmem (!%p419_p3), [#allocation8], %s1439_s16  ;;  %p1441_p5 = scmp.ne.s32.totalorder (!%p419_p3), %s1774_s26, 0 }
  0x4e   : > { %s481_s12 = scalar_select %p480_p4, %s1778_s27, 1 }
  0x4f   : > { %488 = sbr.rel (%p1441_p5) target bundleno = 91 (0x5b), region = 171 }
  0x50   : > { %s1440_s13 = sshll.u32 %s481_s12, 3 }
  0x51   : > { %s1971_s9 = scalar_lea.vmem %s2165_s0, %s1440_s13 }
  0x54   : > { %vm489_vm0 = vcmask 7168   ;;  %vm498_vm1 = vcmask 64512   ;;  %v1792_v12 = vmov -inf   ;;  %v1793_v13 = vmov 0.0  }
  0x55   : > { %490 = vst.msk [vmem:[#allocation2] sm:$0xff] %vm489_vm0, %v1792_v12  ;;  %491 = vst.msk [vmem:[#allocation2 + $0x8] sm:$0xff] %vm489_vm0, %v1792_v12 }
  0x56   : > { %492 = vst.msk [vmem:[#allocation2 + $0x10] sm:$0xff] %vm489_vm0, %v1792_v12  ;;  %493 = vst.msk [vmem:[#allocation2 + $0x18] sm:$0xff] %vm489_vm0, %v1792_v12 }
  0x57   : > { %494 = vst.msk [vmem:[#allocation3] sm:$0xff] %vm489_vm0, %v1793_v13  ;;  %495 = vst.msk [vmem:[#allocation3 + $0x8] sm:$0xff] %vm489_vm0, %v1793_v13 }
  0x58   : > { %496 = vst.msk [vmem:[#allocation3 + $0x10] sm:$0xff] %vm489_vm0, %v1793_v13  ;;  %497 = vst.msk [vmem:[#allocation3 + $0x18] sm:$0xff] %vm489_vm0, %v1793_v13 }
  0x59   : > { %499 = vst.msk [vmem:[#allocation4] sm:$0xff] %vm498_vm1, %v1793_v13  ;;  %500 = vst.msk [vmem:[#allocation4 + $0x8] sm:$0xff] %vm498_vm1, %v1793_v13 }
  0x5a   : > { %501 = vst.msk [vmem:[#allocation4 + $0x10] sm:$0xff] %vm498_vm1, %v1793_v13  ;;  %502 = vst.msk [vmem:[#allocation4 + $0x18] sm:$0xff] %vm498_vm1, %v1793_v13 }
  0x5b PF: > { %v507_v14 = vld [vmem:[%s1975_s2] sm:$0xf]  ;;  %vm511_vm2 = vcmask 64512   ;;  %v508_v15 = vld [vmem:[%s1975_s2 + $0x4] sm:$0xf]  ;;  %v1794_v16 = vmov 0.0  }
  0x5c   : > { %1487 = vmatprep.subr.bf16.mxu0 %v1794_v16  ;;  %1493 = vmatprep.subr.bf16.mxu1 %v1794_v16  ;;  %v516_v17 = vsel %vm511_vm2, %v507_v14, 0  ;;  %v562_v18 = vsel %vm511_vm2, %v508_v15, 0  ;;  %vm1795_vm3 = vmmov 0   ;;  %v509_v19 = vld [vmem:[%s1975_s2 + $0x8] sm:$0xf]  ;;  %v1796_v59 = vmov 0  }
  0x5d   : > { %1488 = vmatpush3.bf16.xpose.msra.mxu0 %v516_v17  ;;  %1494 = vmatpush3.bf16.xpose.msra.mxu1 %v562_v18  ;;  %v510_v20 = vld [vmem:[%s1975_s2 + $0xc] sm:$0xf]  ;;  %v503_v21 = vld [vmem:[%s1973_s1] sm:$0xf]  ;;  %v504_v22 = vld [vmem:[%s1973_s1 + $0x4] sm:$0xf] }
  0x5e   : > { %1489 = vmatprep.mubr.msk.bf16.mxu0 %vm1795_vm3, %v1794_v16  ;;  %1495 = vmatprep.mubr.msk.bf16.mxu1 %vm1795_vm3, %v1794_v16  ;;  %v608_v23 = vsel %vm511_vm2, %v509_v19, 0  ;;  %v654_v24 = vsel %vm511_vm2, %v510_v20, 0  ;;  %v505_v25 = vld [vmem:[%s1973_s1 + $0x8] sm:$0xf]  ;;  %v506_v26 = vld [vmem:[%s1973_s1 + $0xc] sm:$0xf] }
  0x5f   : > { %1499 = vmatprep.subr.bf16.mxu0 %v1794_v16  ;;  %1505 = vmatprep.subr.bf16.mxu1 %v1794_v16  ;;  %v712_v60 = vld [vmem:[#allocation2] sm:$0xff]  ;;  %vm800_vm8 = vcmask 7168   ;;  %v2026_v63 = vld [vmem:[#allocation2 + $0x8] sm:$0xff]  ;;  %v714_v4 = vld [vmem:[#allocation2 + $0x10] sm:$0xff]  ;;  %vm844_vm9 = vcmask 1043456   ;;  %p1450_p6 = scmp.ne.s32.totalorder %s1774_s26, 1 }
  0x60   : > { %1654 = vset.pattern.permute.xlu0 %v1796_v59  ;;  %1655 = vset.pattern.permute.xlu1 %v1796_v59  ;;  %v2037_v8 = vld [vmem:[#allocation2 + $0x18] sm:$0xff]  ;;  %v837_v12 = vld [vmem:[%s1977_s3] sm:$0xf]  ;;  %v838_v15 = vld [vmem:[%s1977_s3 + $0x4] sm:$0xf] }
  0x61   : > { %v846_v14 = vsel %vm844_vm9, %v837_v12, 0  ;;  %v892_v17 = vsel %vm844_vm9, %v838_v15, 0 }
  0x64   : > { %1490 = vmatmul.mubr.msk.bf16.vlgmr.msra.gmra.mxu0 %vm511_vm2, %v503_v21  ;;  %1496 = vmatmul.mubr.msk.bf16.vlgmr.msra.gmra.mxu1 %vm511_vm2, %v504_v22 }
  0x65   : > { %1500 = vmatpush3.bf16.xpose.msra.mxu0 %v608_v23  ;;  %1506 = vmatpush3.bf16.xpose.msra.mxu1 %v654_v24 }
  0x66   : > { %1501 = vmatprep.mubr.msk.bf16.mxu0 %vm1795_vm3, %v1794_v16  ;;  %1507 = vmatprep.mubr.msk.bf16.mxu1 %vm1795_vm3, %v1794_v16 }
  0x67   : > { %1511 = vmatprep.subr.bf16.mxu0 %v1794_v16  ;;  %1517 = vmatprep.subr.bf16.mxu1 %v1794_v16 }
  0x6c   : > { %1502 = vmatmul.mubr.msk.bf16.vlgmr.msra.gmra.mxu0 %vm511_vm2, %v505_v25  ;;  %1508 = vmatmul.mubr.msk.bf16.vlgmr.msra.gmra.mxu1 %vm511_vm2, %v506_v26 }
  0x6d   : > { %1513 = vmatprep.mubr.msk.bf16.mxu0 %vm1795_vm3, %v1794_v16  ;;  %1519 = vmatprep.mubr.msk.bf16.mxu1 %vm1795_vm3, %v1794_v16 }
  0x6e   : > { %1512 = vmatpush3.bf16.msra.mxu0 %v846_v14  ;;  %1518 = vmatpush3.bf16.msra.mxu1 %v892_v17  ;;  %v807_v14 = vld [vmem:[#allocation4 + $0x10] sm:$0xff] }
  0x6f   : > { %1523 = vmatprep.subr.bf16.mxu0 %v1794_v16  ;;  %1529 = vmatprep.subr.bf16.mxu1 %v1794_v16 }
 0x124   : > { %v552_v27 = vpop.f32.mrf.mxu0  ;;  %v598_v28 = vpop.f32.mrf.mxu1 }
 0x125   : > { %v696_v29 = vmul.f32 0.17677669, %v552_v27  ;;  %v697_v30 = vmul.f32 0.17677669, %v598_v28 }
 0x126   : > { %v1491_v31 = vpop.f32.mrf.mxu0  ;;  %v1497_v32 = vpop.f32.mrf.mxu1 }
 0x127   : > { %v704_v33 = vmul.f32 0.2, %v696_v29  ;;  %v705_v34 = vmul.f32 0.2, %v697_v30  ;;  %vm700_vm4 = vcmp.ge.f32.partialorder %v696_v29, 0.0  ;;  %vm701_vm5 = vcmp.ge.f32.partialorder %v697_v30, 0.0 }
 0x128   : > { %v555_v35 = vpop.f32.mrf.mxu0  ;;  %v601_v36 = vpop.f32.mrf.mxu1  ;;  %v839_v31 = vld [vmem:[%s1977_s3 + $0x8] sm:$0xf] }
 0x129   : > { %v2016_v37 = vsel %vm700_vm4, %v696_v29, %v704_v33  ;;  %v2020_v41 = vsel %vm701_vm5, %v697_v30, %v705_v34  ;;  %v938_v36 = vsel %vm844_vm9, %v839_v31, 0 }
 0x12a   : > { %v1492_v38 = vpop.f32.mrf.mxu0  ;;  %v1498_v39 = vpop.f32.mrf.mxu1  ;;  %v716_v40 = vsel %vm511_vm2, %v2016_v37, -inf  ;;  %v719_v48 = vsel %vm511_vm2, %v2020_v41, -inf }
 0x12b   : > { %717 = vmax.xlane.f32.xlu0 %v716_v40 }
 0x12c   : > { %v644_v42 = vpop.f32.mrf.mxu0  ;;  %v690_v43 = vpop.f32.mrf.mxu1 }
 0x12d   : > { %v698_v44 = vmul.f32 0.17677669, %v644_v42  ;;  %v699_v45 = vmul.f32 0.17677669, %v690_v43 }
 0x12e   : > { %v1503_v46 = vpop.f32.mrf.mxu0  ;;  %v1509_v47 = vpop.f32.mrf.mxu1 }
 0x12f   : > { %v706_v49 = vmul.f32 0.2, %v698_v44  ;;  %v707_v50 = vmul.f32 0.2, %v699_v45  ;;  %720 = vmax.xlane.f32.xlu0 %v719_v48  ;;  %vm702_vm6 = vcmp.ge.f32.partialorder %v698_v44, 0.0  ;;  %vm703_vm7 = vcmp.ge.f32.partialorder %v699_v45, 0.0 }
 0x130   : > { %v647_v51 = vpop.f32.mrf.mxu0  ;;  %v693_v52 = vpop.f32.mrf.mxu1 }
 0x131   : > { %v710_v53 = vsel %vm702_vm6, %v698_v44, %v706_v49  ;;  %v711_v57 = vsel %vm703_vm7, %v699_v45, %v707_v50 }
 0x132   : > { %v1504_v54 = vpop.f32.mrf.mxu0  ;;  %v1510_v55 = vpop.f32.mrf.mxu1  ;;  %v722_v56 = vsel %vm511_vm2, %v710_v53, -inf  ;;  %v725_v58 = vsel %vm511_vm2, %v711_v57, -inf }
 0x133   : > { %723 = vmax.xlane.f32.xlu1 %v722_v56  ;;  %v777_v56 = vld [vmem:[#allocation3 + $0x8] sm:$0xff] }
 0x137   : > { %726 = vmax.xlane.f32.xlu1 %v725_v58 }
 0x1b4   : > { %v718_v61 = vpop.xlane.xlu0 %717 }
 0x1b5   : > { %v728_v62 = vmax.f32 %v712_v60, %v718_v61 }
 0x1b7   : > { %v732_v0 = vsub.f32 %v712_v60, %v728_v62  ;;  %1034 = vst.msk [vmem:[#allocation2] sm:$0xff] %vm800_vm8, %v728_v62  ;;  %746 = vperm.xlu0 %1654, %v728_v62   ;;  %v778_v62 = vld [vmem:[#allocation3 + $0x10] sm:$0xff] }
 0x1b8   : > { %v721_v1 = vpop.xlane.xlu0 %720 }
 0x1b9   : > { %v736_v2 = vmul.f32 1.442695, %v732_v0  ;;  %v2030_v3 = vmax.f32 %v2026_v63, %v721_v1 }
 0x1bb   : > { %1656 = vpow2.f32 %v736_v2  ;;  %v733_v5 = vsub.f32 %v2026_v63, %v2030_v3  ;;  %1035 = vst.msk [vmem:[#allocation2 + $0x8] sm:$0xff] %vm800_vm8, %v2030_v3  ;;  %751 = vperm.xlu1 %1655, %v2030_v3   ;;  %v805_v63 = vld [vmem:[#allocation4] sm:$0xff]  ;;  %v779_v2 = vld [vmem:[#allocation3 + $0x18] sm:$0xff] }
 0x1bc   : > { %v724_v6 = vpop.xlane.xlu1 %723 }
 0x1bd   : > { %v730_v7 = vmax.f32 %v714_v4, %v724_v6  ;;  %v738_v44 = vmul.f32 1.442695, %v733_v5  ;;  %v806_v5 = vld [vmem:[#allocation4 + $0x8] sm:$0xff] }
 0x1bf   : > { %v734_v9 = vsub.f32 %v714_v4, %v730_v7  ;;  %1036 = vst.msk [vmem:[#allocation2 + $0x10] sm:$0xff] %vm800_vm8, %v730_v7  ;;  %756 = vperm.xlu1 %1655, %v730_v7  }
 0x1c0   : > { %v727_v10 = vpop.xlane.xlu1 %726 }
 0x1c1   : > { %v2041_v11 = vmax.f32 %v2037_v8, %v727_v10  ;;  %v740_v33 = vmul.f32 1.442695, %v734_v9 }
 0x1c3   : > { %v735_v13 = vsub.f32 %v2037_v8, %v2041_v11  ;;  %1037 = vst.msk [vmem:[#allocation2 + $0x18] sm:$0xff] %vm800_vm8, %v2041_v11  ;;  %761 = vperm.xlu1 %1655, %v2041_v11  }
 0x1c8   : > { %v1657_v18 = vpop.eup %1656 }
 0x1c9   : > { %811 = vperm.xlu1 %1655, %v1657_v18  }
 0x232   : > { %v747_v19 = vpop.permute.xlu0 %746 }
 0x233   : > { %v764_v20 = vsub.f32 %v2016_v37, %v747_v19  ;;  %v840_v37 = vld [vmem:[%s1977_s3 + $0xc] sm:$0xf] }
 0x235   : > { %v768_v21 = vmul.f32 1.442695, %v764_v20 }
 0x236   : > { %v752_v22 = vpop.permute.xlu1 %751 }
 0x237   : > { %1658 = vpow2.f32 %v768_v21  ;;  %v765_v23 = vsub.f32 %v2020_v41, %v752_v22  ;;  %v984_v41 = vsel %vm844_vm9, %v840_v37, 0 }
 0x239   : > { %v770_v24 = vmul.f32 1.442695, %v765_v23  ;;  %v808_v23 = vld [vmem:[#allocation4 + $0x18] sm:$0xff] }
 0x23a   : > { %v757_v25 = vpop.permute.xlu1 %756 }
 0x23b   : > { %1660 = vpow2.f32 %v770_v24  ;;  %v766_v26 = vsub.f32 %v710_v53, %v757_v25  ;;  %v776_v53 = vld [vmem:[#allocation3] sm:$0xff] }
 0x23c   : > { %v780_v54 = vmul.f32 %v1657_v18, %v776_v53 }
 0x23d   : > { %v772_v27 = vmul.f32 1.442695, %v766_v26 }
 0x23e   : > { %v762_v28 = vpop.permute.xlu1 %761 }
 0x23f   : > { %1662 = vpow2.f32 %v772_v27  ;;  %v767_v29 = vsub.f32 %v711_v57, %v762_v28 }
 0x241   : > { %v774_v30 = vmul.f32 1.442695, %v767_v29 }
 0x243   : > { %1664 = vpow2.f32 %v774_v30 }
 0x244   : > { %v1659_v32 = vpop.eup %1658  ;;  %1666 = vpow2.f32 %v740_v33  ;;  %v812_v52 = vpop.permute.xlu1 %811 }
 0x245   : > { %v784_v34 = vsel %vm511_vm2, %v1659_v32, 0.0  ;;  %v833_v35 = vpack.c.bf16 %v1659_v32, %v1659_v32  ;;  %1668 = vpow2.f32 %v738_v44  ;;  %v829_v4 = vmul.f32 %v812_v52, %v805_v63 }
 0x246   : > { %785 = vadd.xlane.f32.xlu1 %v784_v34 }
 0x247   : > { %1514 = vmatmul.mubr.msk.bf16.vlgmr.msra.gmra.mxu0 %vm511_vm2, %v833_v35 }
 0x248   : > { %v1661_v38 = vpop.eup %1660  ;;  %1524 = vmatpush3.bf16.msra.mxu0 %v938_v36  ;;  %1525 = vmatprep.mubr.msk.bf16.mxu0 %vm1795_vm3, %v1794_v16 }
 0x249   : > { %v787_v39 = vsel %vm511_vm2, %v1661_v38, 0.0  ;;  %v834_v40 = vpack.c.bf16 %v1661_v38, %v1661_v38 }
 0x24a   : > { %788 = vadd.xlane.f32.xlu0 %v787_v39 }
 0x24b   : > { %1520 = vmatmul.mubr.msk.bf16.vlgmr.msra.gmra.mxu1 %vm511_vm2, %v834_v40 }
 0x24c   : > { %v1663_v42 = vpop.eup %1662  ;;  %1530 = vmatpush3.bf16.msra.mxu1 %v984_v41  ;;  %1531 = vmatprep.mubr.msk.bf16.mxu1 %vm1795_vm3, %v1794_v16  ;;  %v742_v16 = vmul.f32 1.442695, %v735_v13 }
 0x24d   : > { %v835_v43 = vpack.c.bf16 %v1663_v42, %v1663_v42  ;;  %v790_v49 = vsel %vm511_vm2, %v1663_v42, 0.0 }
 0x24e   : > { %1670 = vpow2.f32 %v742_v16 }
 0x24f   : > { %1526 = vmatmul.mubr.msk.bf16.vlgmr.msra.gmra.mxu0 %vm511_vm2, %v835_v43 }
 0x250   : > { %v1665_v45 = vpop.eup %1664 }
 0x251   : > { %v836_v46 = vpack.c.bf16 %v1665_v45, %v1665_v45  ;;  %v1667_v47 = vpop.eup %1666  ;;  %v793_v50 = vsel %vm511_vm2, %v1665_v45, 0.0 }
 0x252   : > { %v1669_v48 = vpop.eup %1668  ;;  %v782_v0 = vmul.f32 %v1667_v47, %v778_v62 }
 0x253   : > { %1532 = vmatmul.mubr.msk.bf16.vlgmr.msra.gmra.mxu1 %vm511_vm2, %v836_v46  ;;  %v781_v58 = vmul.f32 %v1669_v48, %v777_v56 }
 0x257   : > { %821 = vperm.xlu1 %1655, %v1667_v47  }
 0x25b   : > { %v1671_v51 = vpop.eup %1670 }
 0x25c   : > { %v783_v8 = vmul.f32 %v1671_v51, %v779_v2 }
 0x260   : > { %816 = vperm.xlu0 %1654, %v1669_v48  }
 0x27b   : > { %791 = vadd.xlane.f32.xlu1 %v790_v49 }
 0x27f   : > { %794 = vadd.xlane.f32.xlu1 %v793_v50 }
 0x290   : > { %826 = vperm.xlu1 %1655, %v1671_v51  }
 0x2cf   : > { %v786_v55 = vpop.xlane.xlu1 %785 }
 0x2d0   : > { %v796_v57 = vadd.f32 %v786_v55, %v780_v54 }
 0x2d2   : > { %801 = vst.msk [vmem:[#allocation3] sm:$0xff] %vm800_vm8, %v796_v57 }
 0x2d3   : > { %v789_v59 = vpop.xlane.xlu0 %788  ;;  %v822_v61 = vpop.permute.xlu1 %821 }
 0x2d4   : > { %v797_v60 = vadd.f32 %v789_v59, %v781_v58  ;;  %v831_v21 = vmul.f32 %v822_v61, %v807_v14 }
 0x2d6   : > { %802 = vst.msk [vmem:[#allocation3 + $0x8] sm:$0xff] %vm800_vm8, %v797_v60 }
 0x2db   : > { %v817_v6 = vpop.permute.xlu0 %816 }
 0x2dc   : > { %v830_v13 = vmul.f32 %v817_v6, %v806_v5 }
 0x304   : > { %v792_v1 = vpop.xlane.xlu1 %791 }
 0x305   : > { %v798_v3 = vadd.f32 %v792_v1, %v782_v0 }
 0x307   : > { %803 = vst.msk [vmem:[#allocation3 + $0x10] sm:$0xff] %vm800_vm8, %v798_v3  ;;  %v882_v7 = vpop.f32.mrf.mxu0 }
 0x308   : > { %v1026_v9 = vadd.f32 %v882_v7, %v829_v4  ;;  %v795_v10 = vpop.xlane.xlu1 %794 }
 0x309   : > { %v799_v11 = vadd.f32 %v795_v10, %v783_v8  ;;  %v1515_v12 = vpop.f32.mrf.mxu0 }
 0x30a   : > { %1030 = vst.msk [vmem:[#allocation4] sm:$0xff] %vm511_vm2, %v1026_v9 }
 0x30b   : > { %804 = vst.msk [vmem:[#allocation3 + $0x18] sm:$0xff] %vm800_vm8, %v799_v11  ;;  %v885_v15 = vpop.f32.mrf.mxu0  ;;  %v928_v17 = vpop.f32.mrf.mxu1 }
 0x30c   : > { %v1027_v18 = vadd.f32 %v928_v17, %v830_v13  ;;  %v827_v22 = vpop.permute.xlu1 %826 }
 0x30d   : > { %v1516_v19 = vpop.f32.mrf.mxu0  ;;  %v1521_v20 = vpop.f32.mrf.mxu1  ;;  %v832_v29 = vmul.f32 %v827_v22, %v808_v23 }
 0x30e   : > { %1031 = vst.msk [vmem:[#allocation4 + $0x8] sm:$0xff] %vm511_vm2, %v1027_v18 }
 0x30f   : > { %v931_v24 = vpop.f32.mrf.mxu1  ;;  %v974_v25 = vpop.f32.mrf.mxu0 }
 0x310   : > { %v1028_v26 = vadd.f32 %v974_v25, %v831_v21 }
 0x311   : > { %v1522_v27 = vpop.f32.mrf.mxu1  ;;  %v1527_v28 = vpop.f32.mrf.mxu0 }
 0x312   : > { %1032 = vst.msk [vmem:[#allocation4 + $0x10] sm:$0xff] %vm511_vm2, %v1028_v26 }
 0x313   : > { %v977_v30 = vpop.f32.mrf.mxu0  ;;  %v1020_v31 = vpop.f32.mrf.mxu1 }
 0x314   : > { %v1029_v32 = vadd.f32 %v1020_v31, %v832_v29 }
 0x315   : > { %v1528_v33 = vpop.f32.mrf.mxu0  ;;  %v1533_v34 = vpop.f32.mrf.mxu1  ;;  %1041 = sbr.rel (%p1450_p6) target bundleno = 1149 (0x47d), region = 175 }
 0x316   : > { %1033 = vst.msk [vmem:[#allocation4 + $0x18] sm:$0xff] %vm511_vm2, %v1029_v32 }
 0x317   : > { %v1023_v35 = vpop.f32.mrf.mxu1 }
 0x319   : > { %v1534_v36 = vpop.f32.mrf.mxu1 }
 0x31a   : > { %v1047_v37 = vld [vmem:[#allocation3 + $0x8] sm:$0xff]  ;;  %v1048_v38 = vld [vmem:[#allocation3 + $0x10] sm:$0xff]  ;;  %v1046_v39 = vld [vmem:[#allocation3] sm:$0xff]  ;;  %v1797_v40 = vmov 0   ;;  %v1798_v43 = vmov 0.0   ;;  %vm1799_vm10 = vmmov 0  }
 0x31b   : > { %1672 = vset.pattern.permute.xlu0 %v1797_v40  ;;  %1674 = vrcp.f32 %v1047_v37  ;;  %1673 = vset.pattern.permute.xlu1 %v1797_v40  ;;  %v1049_v41 = vld [vmem:[#allocation3 + $0x18] sm:$0xff]  ;;  %v1451_v42 = vld [vmem:[%s2169_s4 + $0x4] sm:$0xf]  ;;  %v1082_v46 = vld [vmem:[%s2169_s4] sm:$0xf]  ;;  %vm1285_vm11 = vcmask 261120  }
 0x31c   : > { %1676 = vrcp.f32 %v1048_v38  ;;  %1535 = vmatprep.subr.bf16.mxu0 %v1798_v43  ;;  %v1089_v44 = vsel %vm844_vm9, %v1451_v42, 0  ;;  %1541 = vmatprep.subr.bf16.mxu1 %v1798_v43  ;;  %v1135_v48 = vsel %vm844_vm9, %v1082_v46, 0  ;;  %v1043_v50 = vld [vmem:[#allocation4 + $0x8] sm:$0xff]  ;;  %v1044_v55 = vld [vmem:[#allocation4 + $0x10] sm:$0xff]  ;;  %v1042_v56 = vld [vmem:[#allocation4] sm:$0xff] }
 0x31d   : > { %1678 = vrcp.f32 %v1046_v39  ;;  %1536 = vmatpush3.bf16.msra.mxu0 %v1089_v44  ;;  %1537 = vmatprep.mubr.msk.bf16.mxu0 %vm1799_vm10, %v1798_v43  ;;  %v1454_v52 = vld [vmem:[%s2169_s4 + $0x8] sm:$0xf]  ;;  %v1456_v60 = vld [vmem:[%s2169_s4 + $0xc] sm:$0xf]  ;;  %v1045_v2 = vld [vmem:[#allocation4 + $0x18] sm:$0xff] }
 0x31e   : > { %1680 = vrcp.f32 %v1049_v41  ;;  %1547 = vmatprep.subr.bf16.mxu0 %v1798_v43  ;;  %1543 = vmatprep.mubr.msk.bf16.mxu1 %vm1799_vm10, %v1798_v43  ;;  %v1183_v58 = vsel %vm844_vm9, %v1454_v52, 0  ;;  %v1232_v0 = vsel %vm844_vm9, %v1456_v60, 0  ;;  %v1458_v21 = vld [vmem:[%s2170_s5] ss:$0 sm:$0xff] }
 0x31f   : > { %1542 = vmatpush3.bf16.msra.mxu1 %v1135_v48  ;;  %v1283_v23 = vld [vmem:[%s1971_s9] sm:$0xff] }
 0x320   : > { %1553 = vmatprep.subr.bf16.mxu1 %v1798_v43 }
 0x328   : > { %v1675_v45 = vpop.eup %1674 }
 0x329   : > { %v1677_v47 = vpop.eup %1676  ;;  %1061 = vperm.xlu0 %1672, %v1675_v45  }
 0x32a   : > { %v1679_v49 = vpop.eup %1678  ;;  %1066 = vperm.xlu1 %1673, %v1677_v47  }
 0x32b   : > { %v1681_v16 = vpop.eup %1680 }
 0x32d   : > { %1056 = vperm.xlu0 %1672, %v1679_v49  }
 0x32e   : > { %1071 = vperm.xlu1 %1673, %v1681_v16  }
 0x3a4   : > { %v1062_v51 = vpop.permute.xlu0 %1061 }
 0x3a5   : > { %v1075_v53 = vmul.f32 %v1062_v51, %v1043_v50  ;;  %v1067_v54 = vpop.permute.xlu1 %1066 }
 0x3a6   : > { %v1076_v61 = vmul.f32 %v1067_v54, %v1044_v55 }
 0x3a7   : > { %v1079_v57 = vpack.c.bf16 %v1075_v53, %v1075_v53 }
 0x3a8   : > { %v1057_v59 = vpop.permute.xlu0 %1056  ;;  %v1080_v3 = vpack.c.bf16 %v1076_v61, %v1076_v61 }
 0x3a9   : > { %v1074_v62 = vmul.f32 %v1057_v59, %v1042_v56  ;;  %1538 = vmatmul.mubr.msk.bf16.vlgmr.msra.gmra.mxu0 %vm511_vm2, %v1079_v57  ;;  %v1072_v1 = vpop.permute.xlu1 %1071 }
 0x3aa   : > { %1548 = vmatpush3.bf16.msra.mxu0 %v1183_v58  ;;  %1549 = vmatprep.mubr.msk.bf16.mxu0 %vm1799_vm10, %v1798_v43  ;;  %v1077_v4 = vmul.f32 %v1072_v1, %v1045_v2 }
 0x3ab   : > { %v1078_v63 = vpack.c.bf16 %v1074_v62, %v1074_v62 }
 0x3ac   : > { %v1081_v5 = vpack.c.bf16 %v1077_v4, %v1077_v4 }
 0x3ad   : > { %1544 = vmatmul.mubr.msk.bf16.vlgmr.msra.gmra.mxu1 %vm511_vm2, %v1078_v63 }
 0x3ae   : > { %1554 = vmatpush3.bf16.msra.mxu1 %v1232_v0  ;;  %1555 = vmatprep.mubr.msk.bf16.mxu1 %vm1799_vm10, %v1798_v43 }
 0x3b1   : > { %1550 = vmatmul.mubr.msk.bf16.vlgmr.msra.gmra.mxu0 %vm511_vm2, %v1080_v3 }
 0x3b5   : > { %1556 = vmatmul.mubr.msk.bf16.vlgmr.msra.gmra.mxu1 %vm511_vm2, %v1081_v5 }
 0x469   : > { %v1125_v6 = vpop.f32.mrf.mxu0 }
 0x46b   : > { %v1539_v7 = vpop.f32.mrf.mxu0 }
 0x46d   : > { %v1128_v8 = vpop.f32.mrf.mxu0  ;;  %v1171_v9 = vpop.f32.mrf.mxu1 }
 0x46e   : > { %v1172_v14 = vadd.f32 %v1171_v9, %v1125_v6 }
 0x46f   : > { %v1540_v10 = vpop.f32.mrf.mxu0  ;;  %v1545_v11 = vpop.f32.mrf.mxu1 }
 0x471   : > { %v1174_v12 = vpop.f32.mrf.mxu1  ;;  %v1219_v13 = vpop.f32.mrf.mxu0 }
 0x472   : > { %v1225_v18 = vadd.f32 %v1219_v13, %v1172_v14 }
 0x473   : > { %v1546_v15 = vpop.f32.mrf.mxu1  ;;  %v1551_v17 = vpop.f32.mrf.mxu0 }
 0x475   : > { %v1222_v19 = vpop.f32.mrf.mxu0  ;;  %v1268_v20 = vpop.f32.mrf.mxu1 }
 0x476   : > { %v1274_v22 = vadd.f32 %v1268_v20, %v1225_v18 }
 0x477   : > { %v1552_v24 = vpop.f32.mrf.mxu0  ;;  %v1557_v25 = vpop.f32.mrf.mxu1 }
 0x478   : > { %v1282_v26 = vadd.f32 %v1458_v21, %v1274_v22 }
 0x479   : > { %v1271_v27 = vpop.f32.mrf.mxu1 }
 0x47a   : > { %v1284_v28 = vadd.f32 %v1283_v23, %v1282_v26 }
 0x47b   : > { %v1558_v29 = vpop.f32.mrf.mxu1 }
 0x47c   : > { %1286 = vst.msk [vmem:[%s1979_s29] sm:$0xff] %vm1285_vm11, %v1284_v28 }
 0x47d PF: > { %s1460_s13 = sshll.u32 %s1778_s27, 7  ;;  %s1301_s2 = sshll.u32 %s1979_s29, 4  ;;  %s1302_s2 = int_to_ptr.vmem [resolvable:$true] %s1301_s2 }
 0x47e   : > { %s1299_s1 = scalar_lea.hbm %s2171_s6, %s1460_s13  ;;  %s1288_s9 = scalar_lea.sflag [#allocation9], %s1961_s17 }
 0x47f   : > { %s1682_s3 = scalar_lea.vmem %s1302_s2, 128  ;;  %s1800_s22 = smov [#allocation8]  }
 0x480   : > { %p1683_p7 = scmp.ne.s32.totalorder %s1302_s2, %s1682_s3  ;;  %s1686_s26 = sshll.u32 %s1800_s22, 4  ;;  %s1687_s26 = int_to_ptr.vmem [resolvable:$false] %s1686_s26 }
 0x481   : > { %s1688_s14 = scalar_lea.vmem %s1687_s26, 256  ;;  %p1689_p10 = scmp.lt.s32.totalorder %s1302_s2, %s1687_s26 }
 0x482   : > { %p1684_p8 = pnand %p1683_p7, %p1928_p12  ;;  %p1690_p11 = scmp.lt.s32.totalorder %s1688_s14, %s1682_s3 }
 0x484   : > { %p1685_p9 = pneg %p1684_p8  ;;  %p1691_p0 = por %p1690_p11, %p1689_p10 }
 0x486   : > { %p1692_p1 = pnand %p1691_p0, %p1685_p9 }
 0x488   : > { %1695 = shalt.err (!%p1692_p1)
}
 0x489   : > { %s1696_s27 = scalar_lea.hbm %s1299_s1, 128  ;;  %s1700_s11 = scalar_lea.hbm %s2171_s6, 256 }
 0x48a   : > { %p1697_p2 = scmp.ne.s32.totalorder %s1299_s1, %s1696_s27  ;;  %p1701_p5 = scmp.lt.s32.totalorder %s1299_s1, %s2171_s6 }
 0x48b   : > { %p1702_p6 = scmp.lt.s32.totalorder %s1700_s11, %s1696_s27 }
 0x48c   : > { %p1698_p3 = pnand %p1697_p2, %p1928_p12 }
 0x48d   : > { %p1703_p7 = por %p1702_p6, %p1701_p5 }
 0x48e   : > { %p1699_p4 = pneg %p1698_p3 }
 0x490   : > { %p1704_p8 = pnand %p1703_p7, %p1699_p4 }
 0x492   : > { %1707 = shalt.err (!%p1704_p8)
}
 0x493   : > { %1559 = dma.vmem_to_hbm [thread:$0]  (%p1928_p12), %s1302_s2, 128, %s1299_s1, %s1288_s9  }
 0x494 PF: > { %p1565_p9 = scmp.ge.s32.totalorder %s1790_s30, 2  ;;  %s1313_s12 = sand.u32 1, %s1754_s21  }
 0x495   : > { %s1314_s13 = scalar_lea.sflag [#allocation9], %s1313_s12 }
 0x496   : > { %p1562_p10 = pnand %p1565_p9, %p1932_p13 }
 0x498   : > { %p1563_p11 = pneg %p1562_p10 }
 0x49a   : > { %1749 = dma.done.wait (%p1563_p11), %s1314_s13, 128  }
 0x49b   : > { %1751 = vsyncadd (%p1563_p11), %s1314_s13, 4294967168  ;;  %s19_s30 = sadd.s32 1, %s1790_s30   ;;  %s2188_s27 = sld [smem:[#allocation11_spill]] }
 0x49c   : > { %p16_p0 = scmp.ge.s32.totalorder %s19_s30, 6   ;;  %s2189_s19 = sld [smem:[#allocation12_spill]] }
 0x49d   : > { %s2190_s29 = sld [smem:[#allocation13_spill]]  ;;  %s2191_s21 = smov %s1766_s24 }
 0x49e   : > { %s2192_s22 = smov %s1762_s23  ;;  %s2193_s23 = smov %s1912_s15 }
 0x49f   : > { %s2194_s24 = smov %s1770_s25  ;;  %s2195_s25 = smov %s1923_s18 }
 0x4a0   : > { %s2196_s26 = smov %s1782_s28  ;;  %18 = sbr.rel (!%p16_p0) target bundleno = 10 (0xa), region = 237 }
 0x4a2   : > { %s2197_s28 = smov %s2189_s19 }
 0x4a5   :  { %1319 = vsyncpa [#allocation9], 1 }
 0x4a6   :  { %1321 = vsyncpa [#allocation9 + $0x1], 1 }

</bundles_post_ra>
